<compile_context>
chip_gen: v6e
topology: v6e:2x2x1
jax: 0.10.0
libtpu: 0.0.40
codegen_flags: <defaults>
</compile_context>

<pallas_src>
import jax
import jax.numpy as jnp
from jax.experimental import pallas as pl
from jax.experimental.pallas import tpu as pltpu

HIDDEN = 100
LANE = 128
_NEG_MASK = -1e30  # baked into padded fc_out bias lanes -> exp() underflows to 0


def _round_up(n, m):
    return ((n + m - 1) // m) * m


def vnet_kernel(x_ref, w1_ref, b1_ref, w2_ref, b2_ref, w3_ref, b3_ref, out_ref):
    """One (TB, ...) batch tile of the full MLP + softmax.

    x_ref : (TB, D_in)   f32
    w*    : bf16, lane-padded to 128;  b* : f32, (1, 128)
            (b3 padded lanes hold -1e30 so they vanish in the softmax)
    out   : (TB, out_dim) f32
    """
    # fc1 + tanh  (bf16 at the MXU, f32 accumulate, f32 activations)
    x = x_ref[...].astype(jnp.bfloat16)
    h1 = jnp.tanh(
        jnp.dot(x, w1_ref[...], preferred_element_type=jnp.float32) + b1_ref[...]
    )
    # fc2 + tanh
    h2 = jnp.tanh(
        jnp.dot(h1.astype(jnp.bfloat16), w2_ref[...],
                preferred_element_type=jnp.float32) + b2_ref[...]
    )
    # fc_out  (padded lanes get 0 + (-1e30) bias automatically)
    logits = (
        jnp.dot(h2.astype(jnp.bfloat16), w3_ref[...],
                preferred_element_type=jnp.float32) + b3_ref[...]
    )

    # Numerically stable softmax over the last axis; exact divide so rows sum
    # to 1 to f32 rounding.
    m = jnp.max(logits, axis=-1, keepdims=True)
    e = jnp.exp(logits - m)
    denom = jnp.sum(e, axis=-1, keepdims=True)

    out_dim = out_ref.shape[-1]
    out_ref[...] = e[:, :out_dim] / denom


def pad_params(params):
    """Pad params to lane-friendly shapes; weights -> bf16, biases stay f32.

    Padded weight rows/cols and hidden-bias entries are zero (tanh(0)=0 so
    padded hidden lanes contribute nothing); padded fc_out bias lanes are
    -1e30 so they contribute exp(.)==0 to the softmax.
    """
    w1, b1, w2, b2, w3, b3 = params
    d_in, h = w1.shape
    d_out = w3.shape[1]
    h_pad = _round_up(h, LANE)
    o_pad = _round_up(d_out, LANE)

    w1p = jnp.zeros((d_in, h_pad), jnp.float32).at[:, :h].set(w1).astype(jnp.bfloat16)
    b1p = jnp.zeros((1, h_pad), jnp.float32).at[:, :h].set(b1)
    w2p = jnp.zeros((h_pad, h_pad), jnp.float32).at[:h, :h].set(w2).astype(jnp.bfloat16)
    b2p = jnp.zeros((1, h_pad), jnp.float32).at[:, :h].set(b2)
    w3p = jnp.zeros((h_pad, o_pad), jnp.float32).at[:h, :d_out].set(w3).astype(jnp.bfloat16)
    b3p = jnp.full((1, o_pad), _NEG_MASK, jnp.float32).at[:, :d_out].set(b3)
    return (w1p, b1p, w2p, b2p, w3p, b3p)


def vnet_forward(x, padded_params, c, objectives, *, tb=512):
    """Streaming VNet forward: one pallas_call over a (cdiv(B, tb),) batch grid."""
    w1p, b1p, w2p, b2p, w3p, b3p = padded_params
    B, d_in = x.shape
    out_dim = c ** objectives

    num_tiles = pl.cdiv(B, tb)
    b_pad = num_tiles * tb
    if b_pad != B:
        x = jnp.pad(x, ((0, b_pad - B), (0, 0)))  # zero rows, discarded below

    def resident(arr):
        # Full-array block, constant block index -> stays in VMEM across the grid.
        return pl.BlockSpec(arr.shape, lambda i: (0, 0))

    probs = pl.pallas_call(
        vnet_kernel,
        out_shape=jax.ShapeDtypeStruct((b_pad, out_dim), jnp.float32),
        grid=(num_tiles,),
        in_specs=[
            pl.BlockSpec((tb, d_in), lambda i: (i, 0)),   # streamed x tile
            resident(w1p), resident(b1p),
            resident(w2p), resident(b2p),
            resident(w3p), resident(b3p),
        ],
        # Last block dim == full array dim (out_dim), so this narrow output is
        # legal and only the useful lanes ever hit HBM.
        out_specs=pl.BlockSpec((tb, out_dim), lambda i: (i, 0)),
        compiler_params=pltpu.CompilerParams(
            dimension_semantics=("parallel",),          # megacore / 2-TC split on v7x
            vmem_limit_bytes=32 * 1024 * 1024,          # safe on v5e/v6e/v7x; usage ~1.5 MiB
        ),
    )(x, w1p, b1p, w2p, b2p, w3p, b3p)

    if b_pad != B:
        probs = probs[:B]                               # drop batch padding only
    # x.view(-1, *[c] * objectives) -- metadata-only reshape
    return probs.reshape((-1,) + (c,) * objectives)


def init_vnet_params(key, ncomp, nstcomp, c=11, objectives=1, use_accrued_reward=False):
    """nn.Linear default init: U[-1/sqrt(fan_in), 1/sqrt(fan_in)].

    Weights stored as (in_features, out_features); biases as (1, out_features).
    """
    reward_size = objectives if use_accrued_reward else 0
    d_in = ncomp * nstcomp + 1 + reward_size
    d_out = c ** objectives
    keys = jax.random.split(key, 6)

    def linear_init(kw, kb, fan_in, fan_out):
        bound = 1.0 / jnp.sqrt(jnp.float32(fan_in))
        w = jax.random.uniform(kw, (fan_in, fan_out), jnp.float32, -bound, bound)
        b = jax.random.uniform(kb, (1, fan_out), jnp.float32, -bound, bound)
        return w, b

    w1, b1 = linear_init(keys[0], keys[1], d_in, HIDDEN)
    w2, b2 = linear_init(keys[2], keys[3], HIDDEN, HIDDEN)
    w3, b3 = linear_init(keys[4], keys[5], HIDDEN, d_out)
    return (w1, b1, w2, b2, w3, b3), d_in


def vnet_reference(x, params):
    """Pure-JAX f32 reference (unpadded params)."""
    w1, b1, w2, b2, w3, b3 = params
    h1 = jnp.tanh(x @ w1 + b1)
    h2 = jnp.tanh(h1 @ w2 + b2)
    logits = h2 @ w3 + b3
    return jax.nn.softmax(logits, axis=-1)


if __name__ == "__main__":
    # VNet-consistent small shapes: ncomp=4, nstcomp=3, c=11, 1 objective,
    # no accrued reward  ->  D_in = 13, D_out = 11.
    ncomp, nstcomp, c, objectives = 4, 3, 11, 1
    batch = 300          # not a multiple of the tile -> exercises batch padding
    tb = 128             # 3 grid tiles -> >= 2 tiles for the v7x parallel axis

    key = jax.random.PRNGKey(0)
    k_params, k_x = jax.random.split(key)

    params, d_in = init_vnet_params(
        k_params, ncomp, nstcomp, c=c, objectives=objectives, use_accrued_reward=False
    )
    padded_params = pad_params(params)
    x = jax.random.normal(k_x, (batch, d_in), dtype=jnp.float32)

    out = vnet_forward(x, padded_params, c, objectives, tb=tb)
    out = jax.block_until_ready(out)

    # Correctness: bf16-at-MXU vs pure-f32 reference; exact-divide softmax.
    ref = vnet_reference(x, params).reshape((-1,) + (c,) * objectives)
    assert out.shape == (batch, c), out.shape
    assert bool(jnp.all(jnp.isfinite(out))), "non-finite output"
    assert jnp.allclose(out, ref, atol=1e-2, rtol=1e-2), "mismatch vs f32 reference"
    assert jnp.allclose(jnp.sum(out, axis=-1), 1.0, atol=1e-3), "softmax rows must sum to 1"

    print("KERNEL_OK")
</pallas_src>

<mosaic_0001>
module attributes {stable_mosaic.version = 11 : i64} {
  func.func @vnet_kernel(%arg0: i32, %arg1: memref<128x13xf32, #tpu.memory_space<vmem>>, %arg2: memref<13x128xbf16, #tpu.memory_space<vmem>>, %arg3: memref<1x128xf32, #tpu.memory_space<vmem>>, %arg4: memref<128x128xbf16, #tpu.memory_space<vmem>>, %arg5: memref<1x128xf32, #tpu.memory_space<vmem>>, %arg6: memref<128x128xbf16, #tpu.memory_space<vmem>>, %arg7: memref<1x128xf32, #tpu.memory_space<vmem>>, %arg8: memref<128x11xf32, #tpu.memory_space<vmem>>) attributes {dimension_semantics = [#tpu.dimension_semantics<parallel>], iteration_bounds = array<i64: 3>, scalar_prefetch = 0 : i64, scratch_operands = 0 : i64, tpu.core_type = #tpu.core_type<tc>, window_params = [{transform_indices = @transform_0, window_bounds = array<i64: 128, 13>}, {pipeline_mode = #tpu.pipeline_mode<synchronous>, transform_indices = @transform_1, window_bounds = array<i64: 13, 128>}, {pipeline_mode = #tpu.pipeline_mode<synchronous>, transform_indices = @transform_2, window_bounds = array<i64: 1, 128>}, {pipeline_mode = #tpu.pipeline_mode<synchronous>, transform_indices = @transform_3, window_bounds = array<i64: 128, 128>}, {pipeline_mode = #tpu.pipeline_mode<synchronous>, transform_indices = @transform_4, window_bounds = array<i64: 1, 128>}, {pipeline_mode = #tpu.pipeline_mode<synchronous>, transform_indices = @transform_5, window_bounds = array<i64: 128, 128>}, {pipeline_mode = #tpu.pipeline_mode<synchronous>, transform_indices = @transform_6, window_bounds = array<i64: 1, 128>}, {transform_indices = @transform_7, window_bounds = array<i64: 128, 11>}]} {
    %c0 = arith.constant 0 : index
    %c0_0 = arith.constant 0 : index
    %0 = vector.load %arg1[%c0, %c0_0] : memref<128x13xf32, #tpu.memory_space<vmem>>, vector<128x13xf32>
    %1 = arith.truncf %0 : vector<128x13xf32> to vector<128x13xbf16>
    %c0_1 = arith.constant 0 : index
    %c0_2 = arith.constant 0 : index
    %2 = vector.load %arg2[%c0_1, %c0_2] : memref<13x128xbf16, #tpu.memory_space<vmem>>, vector<13x128xbf16>
    %cst = arith.constant dense<0.000000e+00> : vector<128x128xf32>
    %3 = tpu.matmul %1, %2, %cst {dimension_numbers = #tpu.dot_dimension_numbers<[1], [0], [0], [1], [0, 0, 1, 1], [], []>} : vector<128x13xbf16>, vector<13x128xbf16>, vector<128x128xf32> -> vector<128x128xf32>
    %c0_3 = arith.constant 0 : index
    %c0_4 = arith.constant 0 : index
    %4 = vector.load %arg3[%c0_3, %c0_4] : memref<1x128xf32, #tpu.memory_space<vmem>>, vector<1x128xf32>
    %5 = vector.broadcast %4 : vector<1x128xf32> to vector<128x128xf32>
    %6 = arith.addf %3, %5 : vector<128x128xf32>
    %7 = math.tanh %6 : vector<128x128xf32>
    %8 = arith.truncf %7 : vector<128x128xf32> to vector<128x128xbf16>
    %c0_5 = arith.constant 0 : index
    %c0_6 = arith.constant 0 : index
    %9 = vector.load %arg4[%c0_5, %c0_6] : memref<128x128xbf16, #tpu.memory_space<vmem>>, vector<128x128xbf16>
    %cst_7 = arith.constant dense<0.000000e+00> : vector<128x128xf32>
    %10 = tpu.matmul %8, %9, %cst_7 {dimension_numbers = #tpu.dot_dimension_numbers<[1], [0], [0], [1], [0, 0, 1, 1], [], []>} : vector<128x128xbf16>, vector<128x128xbf16>, vector<128x128xf32> -> vector<128x128xf32>
    %c0_8 = arith.constant 0 : index
    %c0_9 = arith.constant 0 : index
    %11 = vector.load %arg5[%c0_8, %c0_9] : memref<1x128xf32, #tpu.memory_space<vmem>>, vector<1x128xf32>
    %12 = vector.broadcast %11 : vector<1x128xf32> to vector<128x128xf32>
    %13 = arith.addf %10, %12 : vector<128x128xf32>
    %14 = math.tanh %13 : vector<128x128xf32>
    %15 = arith.truncf %14 : vector<128x128xf32> to vector<128x128xbf16>
    %c0_10 = arith.constant 0 : index
    %c0_11 = arith.constant 0 : index
    %16 = vector.load %arg6[%c0_10, %c0_11] : memref<128x128xbf16, #tpu.memory_space<vmem>>, vector<128x128xbf16>
    %cst_12 = arith.constant dense<0.000000e+00> : vector<128x128xf32>
    %17 = tpu.matmul %15, %16, %cst_12 {dimension_numbers = #tpu.dot_dimension_numbers<[1], [0], [0], [1], [0, 0, 1, 1], [], []>} : vector<128x128xbf16>, vector<128x128xbf16>, vector<128x128xf32> -> vector<128x128xf32>
    %c0_13 = arith.constant 0 : index
    %c0_14 = arith.constant 0 : index
    %18 = vector.load %arg7[%c0_13, %c0_14] : memref<1x128xf32, #tpu.memory_space<vmem>>, vector<1x128xf32>
    %19 = vector.broadcast %18 : vector<1x128xf32> to vector<128x128xf32>
    %20 = arith.addf %17, %19 : vector<128x128xf32>
    %cst_15 = arith.constant dense<0xFF800000> : vector<128xf32>
    %21 = vector.multi_reduction <maximumf>, %20, %cst_15 [1] : vector<128x128xf32> to vector<128xf32>
    %22 = vector.shape_cast %21 : vector<128xf32> to vector<128x1xf32>
    %23 = vector.broadcast %22 : vector<128x1xf32> to vector<128x128xf32>
    %24 = arith.subf %20, %23 : vector<128x128xf32>
    %25 = math.exp %24 : vector<128x128xf32>
    %cst_16 = arith.constant dense<0.000000e+00> : vector<128xf32>
    %26 = vector.multi_reduction <add>, %25, %cst_16 [1] : vector<128x128xf32> to vector<128xf32>
    %27 = vector.shape_cast %26 : vector<128xf32> to vector<128x1xf32>
    %28 = vector.extract_strided_slice %25 {offsets = [0, 0], sizes = [128, 11], strides = [1, 1]} : vector<128x128xf32> to vector<128x11xf32>
    %29 = vector.broadcast %27 : vector<128x1xf32> to vector<128x11xf32>
    %30 = arith.divf %28, %29 : vector<128x11xf32>
    %c0_17 = arith.constant 0 : index
    %c0_18 = arith.constant 0 : index
    %31 = vector.load %arg8[%c0_17, %c0_18] : memref<128x11xf32, #tpu.memory_space<vmem>>, vector<128x11xf32>
    tpu.vector_store %arg8[%c0_17, %c0_18], %30 {strides = array<i32>} : memref<128x11xf32, #tpu.memory_space<vmem>>, vector<128x11xf32>,
    return
  }
  func.func @transform_0(%arg0: i32) -> (i32, i32) {
    %c0_i32 = arith.constant 0 : i32
    %c0_i32_0 = arith.constant 0 : i32
    return %arg0, %c0_i32 : i32, i32
  }
  func.func @transform_1(%arg0: i32) -> (i32, i32) {
    %c0_i32 = arith.constant 0 : i32
    %c0_i32_0 = arith.constant 0 : i32
    %c0_i32_1 = arith.constant 0 : i32
    return %c0_i32, %c0_i32_0 : i32, i32
  }
  func.func @transform_2(%arg0: i32) -> (i32, i32) {
    %c0_i32 = arith.constant 0 : i32
    %c0_i32_0 = arith.constant 0 : i32
    %c0_i32_1 = arith.constant 0 : i32
    return %c0_i32, %c0_i32_0 : i32, i32
  }
  func.func @transform_3(%arg0: i32) -> (i32, i32) {
    %c0_i32 = arith.constant 0 : i32
    %c0_i32_0 = arith.constant 0 : i32
    %c0_i32_1 = arith.constant 0 : i32
    return %c0_i32, %c0_i32_0 : i32, i32
  }
  func.func @transform_4(%arg0: i32) -> (i32, i32) {
    %c0_i32 = arith.constant 0 : i32
    %c0_i32_0 = arith.constant 0 : i32
    %c0_i32_1 = arith.constant 0 : i32
    return %c0_i32, %c0_i32_0 : i32, i32
  }
  func.func @transform_5(%arg0: i32) -> (i32, i32) {
    %c0_i32 = arith.constant 0 : i32
    %c0_i32_0 = arith.constant 0 : i32
    %c0_i32_1 = arith.constant 0 : i32
    return %c0_i32, %c0_i32_0 : i32, i32
  }
  func.func @transform_6(%arg0: i32) -> (i32, i32) {
    %c0_i32 = arith.constant 0 : i32
    %c0_i32_0 = arith.constant 0 : i32
    %c0_i32_1 = arith.constant 0 : i32
    return %c0_i32, %c0_i32_0 : i32, i32
  }
  func.func @transform_7(%arg0: i32) -> (i32, i32) {
    %c0_i32 = arith.constant 0 : i32
    %c0_i32_0 = arith.constant 0 : i32
    return %arg0, %c0_i32 : i32, i32
  }
}

</mosaic_0001>

<bundles_post_ra>
// kernel: tpu_custom_call.1
= control target key start
LH: loop header
LB: loop body
LE: loop exit
PB: predicated region body
PF: predicated region fallthrough
CT: control target
= control target key end

     0   :  { %s1416_s24 = smov 0   ;;  %s1652_s0 = inlined_call_operand.vmem [shape: f32[384,13], index: 0, kind: input, shape index: {}]   ;;  %s1653_s1 = inlined_call_operand.vmem [shape: bf16[13,128], index: 1, kind: input, shape index: {}]   ;;  %s1654_s2 = inlined_call_operand.vmem [shape: f32[1,128], index: 2, kind: input, shape index: {}]   ;;  %s1655_s3 = inlined_call_operand.vmem [shape: bf16[128,128], index: 3, kind: input, shape index: {}]   ;;  %s1656_s4 = inlined_call_operand.vmem [shape: f32[1,128], index: 4, kind: input, shape index: {}]   ;;  %s1657_s5 = inlined_call_operand.vmem [shape: bf16[128,128], index: 5, kind: input, shape index: {}]   ;;  %s1658_s6 = inlined_call_operand.vmem [shape: f32[1,128], index: 6, kind: input, shape index: {}]   ;;  %s1659_s7 = inlined_call_operand.vmem [shape: f32[384,11], index: 7, kind: output, shape index: {}]  }
   0x1 LB: > { %s1051_s25 = sadd.s32 4294967295, %s1373_s24   ;;  %p1055_p0 = scmp.ge.s32.totalorder %s1373_s24, 1  ;;  %s1373_s24 = sphi %s1416_s24, %s17_s24  }
   0x2   : > { %p238_p1 = scmp.lt.s32.totalorder %s1373_s24, 4 }
   0x4   : > { %p239_p2 = pnand %p1055_p0, %p238_p1 }
   0x5   : > { %s1056_s28 = sshll.u32 (!%p239_p2), %s1051_s25, 4 }
   0x6   : > { %242 = sbr.rel (%p239_p2) target bundleno = 996 (0x3e4), region = 48  ;;  %p271_p3 = scmp.lt.s32.totalorder (!%p239_p2), %s1056_s28, 47 }
   0xb   : > { %v1222_v0 = vld [vmem:[%s1653_s1] sm:$0x7f]   ;;  %vm346_vm0 = vcmask 1045504   ;;  %vm347_vm1 = vcmask 1046528   ;;  %v1223_v1 = vld [vmem:[%s1655_s3 + $0x38] sm:$0xff]   ;;  %v1375_v2 = vmov 65535  }
   0xc   : > { %v348_v3 = vsel %vm346_vm0, 4294967295, %v1375_v2  ;;  %1149 = vmatprep.subr.bf16.mxu1 %v1223_v1  ;;  %v1224_v5 = vld [vmem:[%s1655_s3 + $0x30] sm:$0xff]   ;;  %s1661_s28 = smov (!%p271_p3, %s1056_s28), 47  ;;  %vm321_vm2 = vcmask 105472   ;;  %v1225_v31 = vld [vmem:[%s1655_s3 + $0x28] sm:$0xff]   ;;  %v1226_v32 = vld [vmem:[%s1655_s3 + $0x20] sm:$0xff]  }
   0xd   : > { %v349_v4 = vsel %vm347_vm1, %v348_v3, 0  ;;  %1150 = vmatpush3.bf16.msra.mxu1 %v1223_v1  ;;  %s1057_s10 = sshll.u32 %s1661_s28, 3  ;;  %v1227_v33 = vld [vmem:[%s1655_s3 + $0x18] sm:$0xff]   ;;  %v1228_v34 = vld [vmem:[%s1655_s3 + $0x10] sm:$0xff]   ;;  %v1229_v35 = vld [vmem:[%s1655_s3 + $0x8] sm:$0xff]   ;;  %vm978_vm3 = vcmask 89088  }
   0xe   : > { %v351_v6 = vand.u32 %v1222_v0, %v349_v4  ;;  %1151 = vmatprep.subr.bf16.mxu1 %v1224_v5  ;;  %s1441_s13 = scalar_lea.vmem %s1652_s0, %s1057_s10  ;;  %v1230_v36 = vld [vmem:[%s1655_s3] sm:$0xff]   ;;  %v1231_v37 = vld [vmem:[%s1657_s5 + $0x38] sm:$0xff]   ;;  %v1232_v38 = vld [vmem:[%s1657_s5 + $0x30] sm:$0xff]   ;;  %s1599_s9 = scalar_lea.vmem %s1659_s7, %s1057_s10 }
   0xf   : > { %v283_v7 = vld [vmem:[%s1441_s13] sm:$0xff]  ;;  %v284_v8 = vld [vmem:[%s1441_s13 + $0x8] sm:$0xff]  ;;  %v285_v9 = vld [vmem:[%s1441_s13 + $0x10] sm:$0xff] }
  0x10   : > { %1131 = vmatprep.subr.bf16.mxu0 %v351_v6  ;;  %v299_v10 = vpack.c.bf16 %v284_v8, %v283_v7  ;;  %v286_v11 = vld [vmem:[%s1441_s13 + $0x18] sm:$0xff]  ;;  %v287_v12 = vld [vmem:[%s1441_s13 + $0x20] sm:$0xff]  ;;  %v288_v13 = vld [vmem:[%s1441_s13 + $0x28] sm:$0xff] }
  0x11   : > { %1132 = vmatpush3.bf16.msra.mxu0 %v351_v6  ;;  %1152 = vmatpush3.bf16.msra.mxu1 %v1224_v5  ;;  %v300_v14 = vpack.c.bf16 %v286_v11, %v285_v9  ;;  %v301_v15 = vpack.c.bf16 %v288_v13, %v287_v12  ;;  %v289_v16 = vld [vmem:[%s1441_s13 + $0x30] sm:$0xff]  ;;  %v290_v17 = vld [vmem:[%s1441_s13 + $0x38] sm:$0xff]  ;;  %v291_v18 = vld [vmem:[%s1441_s13 + $0x40] sm:$0xff] }
  0x12   : > { %1133 = vmatprep.mubr.msk.bf16.mxu0 %vm321_vm2, %v299_v10  ;;  %v292_v19 = vld [vmem:[%s1441_s13 + $0x48] sm:$0xff]  ;;  %v302_v20 = vpack.c.bf16 %v290_v17, %v289_v16  ;;  %v293_v22 = vld [vmem:[%s1441_s13 + $0x50] sm:$0xff]  ;;  %v294_v23 = vld [vmem:[%s1441_s13 + $0x58] sm:$0xff]  ;;  %1153 = vmatprep.subr.bf16.mxu1 %v1225_v31 }
  0x13   : > { %v303_v21 = vpack.c.bf16 %v292_v19, %v291_v18  ;;  %v295_v24 = vld [vmem:[%s1441_s13 + $0x60] sm:$0xff]  ;;  %v296_v25 = vld [vmem:[%s1441_s13 + $0x68] sm:$0xff]  ;;  %v304_v26 = vpack.c.bf16 %v294_v23, %v293_v22  ;;  %v297_v28 = vld [vmem:[%s1441_s13 + $0x70] sm:$0xff]  ;;  %1181 = vmatprep.subr.bf16.mxu0 %v1231_v37 }
  0x14   : > { %1134 = vmatmul.mubr.msk.bf16.vlgmr.msra.gmra.mxu0 %vm321_vm2, %v300_v14  ;;  %v305_v27 = vpack.c.bf16 %v296_v25, %v295_v24  ;;  %v298_v29 = vld [vmem:[%s1441_s13 + $0x78] sm:$0xff]  ;;  %v1060_v40 = vld [vmem:[%s1654_s2] ss:$0 sm:$0xff] }
  0x15   : > { %1137 = vmatprep.mubr.msk.bf16.mxu0 %vm321_vm2, %v301_v15  ;;  %v306_v30 = vpack.c.bf16 %v298_v29, %v297_v28  ;;  %1154 = vmatpush3.bf16.msra.mxu1 %v1225_v31 }
  0x16   : > { %1155 = vmatprep.subr.bf16.mxu1 %v1226_v32  ;;  %1182 = vmatpush3.bf16.msra.mxu0 %v1231_v37  ;;  %v1238_v37 = vld [vmem:[%s1657_s5] sm:$0xff]  }
  0x17   : > { %1183 = vmatprep.subr.bf16.mxu0 %v1232_v38 }
  0x19   : > { %1156 = vmatpush3.bf16.msra.mxu1 %v1226_v32  ;;  %v1233_v32 = vld [vmem:[%s1657_s5 + $0x28] sm:$0xff]  }
  0x1a   : > { %1157 = vmatprep.subr.bf16.mxu1 %v1227_v33  ;;  %1184 = vmatpush3.bf16.msra.mxu0 %v1232_v38 }
  0x1b   : > { %1185 = vmatprep.subr.bf16.mxu0 %v1233_v32 }
  0x1c   : > { %1138 = vmatmul.mubr.msk.bf16.gmra.mxu0 %vm321_vm2, %v302_v20 }
  0x1d   : > { %1141 = vmatprep.mubr.msk.bf16.mxu0 %vm321_vm2, %v303_v21  ;;  %1158 = vmatpush3.bf16.msra.mxu1 %v1227_v33  ;;  %v1234_v33 = vld [vmem:[%s1657_s5 + $0x20] sm:$0xff]  }
  0x1e   : > { %1159 = vmatprep.subr.bf16.mxu1 %v1228_v34  ;;  %1186 = vmatpush3.bf16.msra.mxu0 %v1233_v32 }
  0x1f   : > { %1187 = vmatprep.subr.bf16.mxu0 %v1234_v33 }
  0x21   : > { %1160 = vmatpush3.bf16.msra.mxu1 %v1228_v34  ;;  %v1235_v34 = vld [vmem:[%s1657_s5 + $0x18] sm:$0xff]  }
  0x22   : > { %1161 = vmatprep.subr.bf16.mxu1 %v1229_v35  ;;  %1188 = vmatpush3.bf16.msra.mxu0 %v1234_v33 }
  0x23   : > { %1189 = vmatprep.subr.bf16.mxu0 %v1235_v34 }
  0x24   : > { %1142 = vmatmul.mubr.msk.bf16.gmra.mxu0 %vm321_vm2, %v304_v26 }
  0x25   : > { %1145 = vmatprep.mubr.msk.bf16.mxu0 %vm321_vm2, %v305_v27  ;;  %1162 = vmatpush3.bf16.msra.mxu1 %v1229_v35  ;;  %v1236_v35 = vld [vmem:[%s1657_s5 + $0x10] sm:$0xff]  }
  0x26   : > { %1163 = vmatprep.subr.bf16.mxu1 %v1230_v36  ;;  %1190 = vmatpush3.bf16.msra.mxu0 %v1235_v34 }
  0x27   : > { %1191 = vmatprep.subr.bf16.mxu0 %v1236_v35 }
  0x29   : > { %1164 = vmatpush3.bf16.msra.mxu1 %v1230_v36  ;;  %v1237_v36 = vld [vmem:[%s1657_s5 + $0x8] sm:$0xff]  }
  0x2a   : > { %1192 = vmatpush3.bf16.msra.mxu0 %v1236_v35 }
  0x2b   : > { %1193 = vmatprep.subr.bf16.mxu0 %v1237_v36 }
  0x2c   : > { %1146 = vmatmul.mubr.msk.bf16.gmra.mxu0 %vm321_vm2, %v306_v30 }
  0x2e   : > { %1194 = vmatpush3.bf16.msra.mxu0 %v1237_v36 }
  0x2f   : > { %1195 = vmatprep.subr.bf16.mxu0 %v1238_v37 }
  0x32   : > { %1196 = vmatpush3.bf16.msra.mxu0 %v1238_v37 }
  0xd4   : > { %v1135_v39 = vpop.f32.mrf.mxu0 }
  0xd5   : > { %v396_v45 = vadd.f32 %v1135_v39, %v1060_v40  ;;  %v1070_v39 = vld [vmem:[%s1656_s4] ss:$0 sm:$0xff] }
  0xd6   : > { %v387_v41 = vpop.f32.mrf.mxu0 }
  0xd7   : > { %v388_v42 = vadd.f32 %v1060_v40, %v387_v41 }
  0xd8   : > { %v1136_v43 = vpop.f32.mrf.mxu0 }
  0xd9   : > { %v399_v44 = vadd.f32 %v1136_v43, %v1060_v40  ;;  %1239 = vtanh.f32 %v388_v42 }
  0xda   : > { %v390_v46 = vpop.f32.mrf.mxu0 }
  0xdb   : > { %v391_v47 = vadd.f32 %v1060_v40, %v390_v46  ;;  %1241 = vtanh.f32 %v399_v44 }
  0xdc   : > { %v1139_v48 = vpop.f32.mrf.mxu0 }
  0xdd   : > { %1243 = vtanh.f32 %v391_v47  ;;  %v412_v53 = vadd.f32 %v1139_v48, %v1060_v40 }
  0xde   : > { %1245 = vtanh.f32 %v396_v45  ;;  %v403_v49 = vpop.f32.mrf.mxu0 }
  0xdf   : > { %v404_v50 = vadd.f32 %v1060_v40, %v403_v49 }
  0xe0   : > { %v1140_v51 = vpop.f32.mrf.mxu0 }
  0xe1   : > { %v415_v52 = vadd.f32 %v1140_v51, %v1060_v40  ;;  %1247 = vtanh.f32 %v404_v50 }
  0xe2   : > { %v406_v54 = vpop.f32.mrf.mxu0 }
  0xe3   : > { %v407_v55 = vadd.f32 %v1060_v40, %v406_v54  ;;  %1249 = vtanh.f32 %v415_v52 }
  0xe4   : > { %v1143_v56 = vpop.f32.mrf.mxu0 }
  0xe5   : > { %1251 = vtanh.f32 %v407_v55  ;;  %v428_v0 = vadd.f32 %v1143_v56, %v1060_v40 }
  0xe6   : > { %1253 = vtanh.f32 %v412_v53  ;;  %v419_v57 = vpop.f32.mrf.mxu0  ;;  %v1240_v59 = vpop.eup %1239 }
  0xe7   : > { %v420_v58 = vadd.f32 %v1060_v40, %v419_v57 }
  0xe8   : > { %v1144_v60 = vpop.f32.mrf.mxu0  ;;  %v1242_v61 = vpop.eup %1241 }
  0xe9   : > { %v431_v62 = vadd.f32 %v1144_v60, %v1060_v40  ;;  %1255 = vtanh.f32 %v420_v58 }
  0xea   : > { %v1244_v63 = vpop.eup %1243  ;;  %v422_v1 = vpop.f32.mrf.mxu0 }
  0xeb   : > { %v1246_v2 = vpop.eup %1245  ;;  %v423_v3 = vadd.f32 %v1060_v40, %v422_v1  ;;  %v466_v4 = vpack.c.bf16 %v1244_v63, %v1240_v59  ;;  %1257 = vtanh.f32 %v431_v62 }
  0xec   : > { %v1147_v5 = vpop.f32.mrf.mxu0  ;;  %v467_v6 = vpack.c.bf16 %v1242_v61, %v1246_v2 }
  0xed   : > { %1259 = vtanh.f32 %v423_v3  ;;  %1165 = vmatprep.mubr.bf16.mxu1 %v466_v4  ;;  %v444_v14 = vadd.f32 %v1147_v5, %v1060_v40 }
  0xee   : > { %1261 = vtanh.f32 %v428_v0  ;;  %v435_v7 = vpop.f32.mrf.mxu0  ;;  %1166 = vmatmul.mubr.bf16.vlgmr.msra.gmra.mxu1 %v467_v6  ;;  %v1248_v9 = vpop.eup %1247 }
  0xef   : > { %v436_v8 = vadd.f32 %v1060_v40, %v435_v7 }
  0xf0   : > { %v1148_v10 = vpop.f32.mrf.mxu0  ;;  %v1250_v11 = vpop.eup %1249 }
  0xf1   : > { %v447_v12 = vadd.f32 %v1148_v10, %v1060_v40  ;;  %1263 = vtanh.f32 %v436_v8 }
  0xf2   : > { %v1252_v13 = vpop.eup %1251  ;;  %v438_v15 = vpop.f32.mrf.mxu0 }
  0xf3   : > { %v1254_v16 = vpop.eup %1253  ;;  %v439_v17 = vadd.f32 %v1060_v40, %v438_v15  ;;  %v468_v18 = vpack.c.bf16 %v1252_v13, %v1248_v9  ;;  %1265 = vtanh.f32 %v447_v12 }
  0xf4   : > { %v469_v19 = vpack.c.bf16 %v1250_v11, %v1254_v16 }
  0xf5   : > { %1267 = vtanh.f32 %v439_v17  ;;  %1169 = vmatprep.mubr.bf16.mxu1 %v468_v18 }
  0xf6   : > { %1269 = vtanh.f32 %v444_v14  ;;  %1170 = vmatmul.mubr.bf16.gmra.mxu1 %v469_v19  ;;  %v1256_v20 = vpop.eup %1255 }
  0xf8   : > { %v1258_v21 = vpop.eup %1257 }
  0xfa   : > { %v1260_v22 = vpop.eup %1259 }
  0xfb   : > { %v1262_v23 = vpop.eup %1261  ;;  %v470_v24 = vpack.c.bf16 %v1260_v22, %v1256_v20 }
  0xfc   : > { %v471_v25 = vpack.c.bf16 %v1258_v21, %v1262_v23 }
  0xfd   : > { %1173 = vmatprep.mubr.bf16.mxu1 %v470_v24 }
  0xfe   : > { %1174 = vmatmul.mubr.bf16.gmra.mxu1 %v471_v25  ;;  %v1264_v26 = vpop.eup %1263 }
 0x100   : > { %v1266_v27 = vpop.eup %1265 }
 0x102   : > { %v1268_v28 = vpop.eup %1267 }
 0x103   : > { %v1270_v29 = vpop.eup %1269  ;;  %v472_v30 = vpack.c.bf16 %v1268_v28, %v1264_v26 }
 0x104   : > { %v473_v31 = vpack.c.bf16 %v1266_v27, %v1270_v29 }
 0x105   : > { %1177 = vmatprep.mubr.bf16.mxu1 %v472_v30 }
 0x106   : > { %1178 = vmatmul.mubr.bf16.gmra.mxu1 %v473_v31  ;;  %v1079_v31 = vld [vmem:[%s1658_s6] ss:$0 sm:$0xff] }
 0x1ae   : > { %v1167_v38 = vpop.f32.mrf.mxu1 }
 0x1af   : > { %v588_v44 = vadd.f32 %v1167_v38, %v1070_v39 }
 0x1b0   : > { %v579_v40 = vpop.f32.mrf.mxu1 }
 0x1b1   : > { %v580_v41 = vadd.f32 %v1070_v39, %v579_v40 }
 0x1b2   : > { %v1168_v42 = vpop.f32.mrf.mxu1 }
 0x1b3   : > { %v591_v43 = vadd.f32 %v1168_v42, %v1070_v39  ;;  %1271 = vtanh.f32 %v580_v41 }
 0x1b4   : > { %v582_v45 = vpop.f32.mrf.mxu1 }
 0x1b5   : > { %v583_v46 = vadd.f32 %v1070_v39, %v582_v45  ;;  %1273 = vtanh.f32 %v591_v43 }
 0x1b6   : > { %v1171_v47 = vpop.f32.mrf.mxu1 }
 0x1b7   : > { %1275 = vtanh.f32 %v583_v46  ;;  %v604_v52 = vadd.f32 %v1171_v47, %v1070_v39 }
 0x1b8   : > { %1277 = vtanh.f32 %v588_v44  ;;  %v595_v48 = vpop.f32.mrf.mxu1 }
 0x1b9   : > { %v596_v49 = vadd.f32 %v1070_v39, %v595_v48 }
 0x1ba   : > { %v1172_v50 = vpop.f32.mrf.mxu1 }
 0x1bb   : > { %v607_v51 = vadd.f32 %v1172_v50, %v1070_v39  ;;  %1279 = vtanh.f32 %v596_v49 }
 0x1bc   : > { %v598_v53 = vpop.f32.mrf.mxu1 }
 0x1bd   : > { %v599_v54 = vadd.f32 %v1070_v39, %v598_v53  ;;  %1281 = vtanh.f32 %v607_v51 }
 0x1be   : > { %v1175_v55 = vpop.f32.mrf.mxu1 }
 0x1bf   : > { %1283 = vtanh.f32 %v599_v54  ;;  %v620_v63 = vadd.f32 %v1175_v55, %v1070_v39 }
 0x1c0   : > { %1285 = vtanh.f32 %v604_v52  ;;  %v611_v56 = vpop.f32.mrf.mxu1  ;;  %v1272_v58 = vpop.eup %1271 }
 0x1c1   : > { %v612_v57 = vadd.f32 %v1070_v39, %v611_v56 }
 0x1c2   : > { %v1176_v59 = vpop.f32.mrf.mxu1  ;;  %v1274_v60 = vpop.eup %1273 }
 0x1c3   : > { %v623_v61 = vadd.f32 %v1176_v59, %v1070_v39  ;;  %1287 = vtanh.f32 %v612_v57 }
 0x1c4   : > { %v1276_v62 = vpop.eup %1275  ;;  %v614_v0 = vpop.f32.mrf.mxu1 }
 0x1c5   : > { %v1278_v1 = vpop.eup %1277  ;;  %v615_v2 = vadd.f32 %v1070_v39, %v614_v0  ;;  %v658_v3 = vpack.c.bf16 %v1276_v62, %v1272_v58  ;;  %1289 = vtanh.f32 %v623_v61 }
 0x1c6   : > { %v1179_v4 = vpop.f32.mrf.mxu1  ;;  %v659_v5 = vpack.c.bf16 %v1274_v60, %v1278_v1 }
 0x1c7   : > { %1291 = vtanh.f32 %v615_v2  ;;  %1197 = vmatprep.mubr.bf16.mxu0 %v658_v3  ;;  %v636_v13 = vadd.f32 %v1179_v4, %v1070_v39 }
 0x1c8   : > { %1293 = vtanh.f32 %v620_v63  ;;  %v627_v6 = vpop.f32.mrf.mxu1  ;;  %1198 = vmatmul.mubr.bf16.vlgmr.msra.gmra.mxu0 %v659_v5  ;;  %v1280_v8 = vpop.eup %1279 }
 0x1c9   : > { %v628_v7 = vadd.f32 %v1070_v39, %v627_v6 }
 0x1ca   : > { %v1180_v9 = vpop.f32.mrf.mxu1  ;;  %v1282_v10 = vpop.eup %1281 }
 0x1cb   : > { %v639_v11 = vadd.f32 %v1180_v9, %v1070_v39  ;;  %1295 = vtanh.f32 %v628_v7 }
 0x1cc   : > { %v1284_v12 = vpop.eup %1283  ;;  %v630_v14 = vpop.f32.mrf.mxu1 }
 0x1cd   : > { %v1286_v15 = vpop.eup %1285  ;;  %v631_v16 = vadd.f32 %v1070_v39, %v630_v14  ;;  %v660_v17 = vpack.c.bf16 %v1284_v12, %v1280_v8  ;;  %1297 = vtanh.f32 %v639_v11 }
 0x1ce   : > { %v661_v18 = vpack.c.bf16 %v1282_v10, %v1286_v15 }
 0x1cf   : > { %1299 = vtanh.f32 %v631_v16  ;;  %1201 = vmatprep.mubr.bf16.mxu0 %v660_v17 }
 0x1d0   : > { %1301 = vtanh.f32 %v636_v13  ;;  %1202 = vmatmul.mubr.bf16.gmra.mxu0 %v661_v18  ;;  %v1288_v19 = vpop.eup %1287 }
 0x1d2   : > { %v1290_v20 = vpop.eup %1289 }
 0x1d4   : > { %v1292_v21 = vpop.eup %1291 }
 0x1d5   : > { %v1294_v22 = vpop.eup %1293  ;;  %v662_v23 = vpack.c.bf16 %v1292_v21, %v1288_v19 }
 0x1d6   : > { %v663_v24 = vpack.c.bf16 %v1290_v20, %v1294_v22 }
 0x1d7   : > { %1205 = vmatprep.mubr.bf16.mxu0 %v662_v23 }
 0x1d8   : > { %1206 = vmatmul.mubr.bf16.gmra.mxu0 %v663_v24  ;;  %v1296_v25 = vpop.eup %1295 }
 0x1da   : > { %v1298_v26 = vpop.eup %1297 }
 0x1dc   : > { %v1300_v27 = vpop.eup %1299 }
 0x1dd   : > { %v1302_v28 = vpop.eup %1301  ;;  %v664_v29 = vpack.c.bf16 %v1300_v27, %v1296_v25 }
 0x1de   : > { %v665_v30 = vpack.c.bf16 %v1298_v26, %v1302_v28 }
 0x1df   : > { %1209 = vmatprep.mubr.bf16.mxu0 %v664_v29 }
 0x1e0   : > { %1210 = vmatmul.mubr.bf16.gmra.mxu0 %v665_v30 }
 0x288   : > { %v1199_v32 = vpop.f32.mrf.mxu0 }
 0x289   : > { %v780_v33 = vadd.f32 %v1199_v32, %v1079_v31 }
 0x28a   : > { %v771_v34 = vpop.f32.mrf.mxu0 }
 0x28b   : > { %v772_v35 = vadd.f32 %v1079_v31, %v771_v34  ;;  %838 = vmax.xlane.f32.xlu1 %v780_v33 }
 0x28c   : > { %v1200_v36 = vpop.f32.mrf.mxu0 }
 0x28d   : > { %v783_v37 = vadd.f32 %v1200_v36, %v1079_v31  ;;  %834 = vmax.xlane.f32.xlu0 %v772_v35 }
 0x28e   : > { %v774_v38 = vpop.f32.mrf.mxu0 }
 0x28f   : > { %v775_v39 = vadd.f32 %v1079_v31, %v774_v38  ;;  %840 = vmax.xlane.f32.xlu1 %v783_v37 }
 0x290   : > { %v1203_v40 = vpop.f32.mrf.mxu0 }
 0x291   : > { %836 = vmax.xlane.f32.xlu0 %v775_v39  ;;  %v796_v42 = vadd.f32 %v1203_v40, %v1079_v31 }
 0x292   : > { %v787_v41 = vpop.f32.mrf.mxu0 }
 0x293   : > { %v788_v46 = vadd.f32 %v1079_v31, %v787_v41 }
 0x294   : > { %v1204_v43 = vpop.f32.mrf.mxu0 }
 0x295   : > { %v799_v44 = vadd.f32 %v1204_v43, %v1079_v31  ;;  %846 = vmax.xlane.f32.xlu0 %v796_v42 }
 0x296   : > { %v790_v45 = vpop.f32.mrf.mxu0 }
 0x297   : > { %848 = vmax.xlane.f32.xlu1 %v799_v44  ;;  %v791_v48 = vadd.f32 %v1079_v31, %v790_v45 }
 0x298   : > { %v1207_v47 = vpop.f32.mrf.mxu0 }
 0x299   : > { %842 = vmax.xlane.f32.xlu0 %v788_v46  ;;  %v812_v50 = vadd.f32 %v1207_v47, %v1079_v31 }
 0x29a   : > { %v803_v49 = vpop.f32.mrf.mxu0 }
 0x29b   : > { %844 = vmax.xlane.f32.xlu1 %v791_v48  ;;  %v1520_v54 = vadd.f32 %v1079_v31, %v803_v49 }
 0x29c   : > { %v1208_v51 = vpop.f32.mrf.mxu0 }
 0x29d   : > { %v1518_v52 = vadd.f32 %v1208_v51, %v1079_v31  ;;  %854 = vmax.xlane.f32.xlu0 %v812_v50 }
 0x29e   : > { %v806_v53 = vpop.f32.mrf.mxu0 }
 0x29f   : > { %856 = vmax.xlane.f32.xlu1 %v1518_v52  ;;  %v1523_v56 = vadd.f32 %v1079_v31, %v806_v53 }
 0x2a0   : > { %v1211_v55 = vpop.f32.mrf.mxu0 }
 0x2a1   : > { %850 = vmax.xlane.f32.xlu0 %v1520_v54  ;;  %v1530_v61 = vadd.f32 %v1211_v55, %v1079_v31 }
 0x2a2   : > { %v819_v57 = vpop.f32.mrf.mxu0 }
 0x2a3   : > { %v1526_v58 = vadd.f32 %v1079_v31, %v819_v57  ;;  %852 = vmax.xlane.f32.xlu1 %v1523_v56 }
 0x2a4   : > { %v1212_v59 = vpop.f32.mrf.mxu0 }
 0x2a5   : > { %858 = vmax.xlane.f32.xlu0 %v1526_v58  ;;  %v1536_v63 = vadd.f32 %v1212_v59, %v1079_v31 }
 0x2a6   : > { %v822_v60 = vpop.f32.mrf.mxu0 }
 0x2a7   : > { %v1532_v62 = vadd.f32 %v1079_v31, %v822_v60 }
 0x2a9   : > { %860 = vmax.xlane.f32.xlu1 %v1532_v62  ;;  %862 = vmax.xlane.f32.xlu0 %v1530_v61 }
 0x2ad   : > { %864 = vmax.xlane.f32.xlu1 %v1536_v63 }
 0x314   : > { %v839_v0 = vpop.xlane.xlu1 %838 }
 0x315   : > { %v868_v1 = vsub.f32 %v780_v33, %v839_v0 }
 0x316   : > { %v835_v2 = vpop.xlane.xlu0 %834 }
 0x317   : > { %v886_v3 = vmul.f32 1.442695, %v868_v1  ;;  %v866_v4 = vsub.f32 %v772_v35, %v835_v2 }
 0x318   : > { %v841_v5 = vpop.xlane.xlu1 %840 }
 0x319   : > { %1303 = vpow2.f32 %v886_v3  ;;  %v882_v6 = vmul.f32 1.442695, %v866_v4  ;;  %v869_v7 = vsub.f32 %v783_v37, %v841_v5 }
 0x31a   : > { %v837_v8 = vpop.xlane.xlu0 %836 }
 0x31b   : > { %v888_v9 = vmul.f32 1.442695, %v869_v7  ;;  %v867_v10 = vsub.f32 %v775_v39, %v837_v8  ;;  %1305 = vpow2.f32 %v882_v6 }
 0x31d   : > { %1307 = vpow2.f32 %v888_v9  ;;  %v884_v11 = vmul.f32 1.442695, %v867_v10 }
 0x31e   : > { %v847_v12 = vpop.xlane.xlu0 %846 }
 0x31f   : > { %v872_v13 = vsub.f32 %v796_v42, %v847_v12  ;;  %1309 = vpow2.f32 %v884_v11 }
 0x320   : > { %v849_v14 = vpop.xlane.xlu1 %848 }
 0x321   : > { %v894_v15 = vmul.f32 1.442695, %v872_v13  ;;  %v873_v16 = vsub.f32 %v799_v44, %v849_v14 }
 0x322   : > { %v843_v17 = vpop.xlane.xlu0 %842 }
 0x323   : > { %1311 = vpow2.f32 %v894_v15  ;;  %v896_v18 = vmul.f32 1.442695, %v873_v16  ;;  %v870_v19 = vsub.f32 %v788_v46, %v843_v17 }
 0x324   : > { %v845_v20 = vpop.xlane.xlu1 %844 }
 0x325   : > { %1313 = vpow2.f32 %v896_v18  ;;  %v890_v21 = vmul.f32 1.442695, %v870_v19  ;;  %v871_v22 = vsub.f32 %v791_v48, %v845_v20 }
 0x326   : > { %v1539_v23 = vpop.eup %1303  ;;  %v855_v24 = vpop.xlane.xlu0 %854 }
 0x327   : > { %1315 = vpow2.f32 %v890_v21  ;;  %v892_v25 = vmul.f32 1.442695, %v871_v22  ;;  %v876_v26 = vsub.f32 %v812_v50, %v855_v24  ;;  %918 = vadd.xlane.f32.xlu0 %v1539_v23 }
 0x328   : > { %v857_v27 = vpop.xlane.xlu1 %856  ;;  %v1542_v28 = vpop.eup %1305 }
 0x329   : > { %1317 = vpow2.f32 %v892_v25  ;;  %v902_v29 = vmul.f32 1.442695, %v876_v26  ;;  %v877_v30 = vsub.f32 %v1518_v52, %v857_v27 }
 0x32a   : > { %v1545_v31 = vpop.eup %1307  ;;  %v851_v32 = vpop.xlane.xlu0 %850 }
 0x32b   : > { %1319 = vpow2.f32 %v902_v29  ;;  %v904_v33 = vmul.f32 1.442695, %v877_v30  ;;  %v874_v34 = vsub.f32 %v1520_v54, %v851_v32  ;;  %920 = vadd.xlane.f32.xlu1 %v1545_v31  ;;  %914 = vadd.xlane.f32.xlu0 %v1542_v28 }
 0x32c   : > { %v853_v35 = vpop.xlane.xlu1 %852  ;;  %v1551_v38 = vpop.eup %1309 }
 0x32d   : > { %1321 = vpow2.f32 %v904_v33  ;;  %v898_v36 = vmul.f32 1.442695, %v874_v34  ;;  %v875_v37 = vsub.f32 %v1523_v56, %v853_v35 }
 0x32e   : > { %v859_v39 = vpop.xlane.xlu0 %858 }
 0x32f   : > { %1323 = vpow2.f32 %v898_v36  ;;  %v900_v40 = vmul.f32 1.442695, %v875_v37  ;;  %v878_v41 = vsub.f32 %v1526_v58, %v859_v39  ;;  %916 = vadd.xlane.f32.xlu1 %v1551_v38 }
 0x330   : > { %v1555_v42 = vpop.eup %1311 }
 0x331   : > { %1325 = vpow2.f32 %v900_v40  ;;  %v906_v43 = vmul.f32 1.442695, %v878_v41  ;;  %926 = vadd.xlane.f32.xlu0 %v1555_v42 }
 0x332   : > { %v1558_v44 = vpop.eup %1313  ;;  %v861_v45 = vpop.xlane.xlu1 %860 }
 0x333   : > { %v863_v46 = vpop.xlane.xlu0 %862  ;;  %1327 = vpow2.f32 %v906_v43  ;;  %v879_v47 = vsub.f32 %v1532_v62, %v861_v45  ;;  %928 = vadd.xlane.f32.xlu1 %v1558_v44 }
 0x334   : > { %v880_v48 = vsub.f32 %v1530_v61, %v863_v46  ;;  %v1563_v49 = vpop.eup %1315 }
 0x335   : > { %v908_v50 = vmul.f32 1.442695, %v879_v47  ;;  %922 = vadd.xlane.f32.xlu0 %v1563_v49 }
 0x336   : > { %v910_v51 = vmul.f32 1.442695, %v880_v48  ;;  %v1566_v52 = vpop.eup %1317  ;;  %v865_v53 = vpop.xlane.xlu1 %864 }
 0x337   : > { %1329 = vpow2.f32 %v908_v50  ;;  %v881_v54 = vsub.f32 %v1536_v63, %v865_v53  ;;  %924 = vadd.xlane.f32.xlu1 %v1566_v52 }
 0x338   : > { %v1570_v55 = vpop.eup %1319  ;;  %1331 = vpow2.f32 %v910_v51 }
 0x339   : > { %v912_v56 = vmul.f32 1.442695, %v881_v54  ;;  %934 = vadd.xlane.f32.xlu0 %v1570_v55 }
 0x33a   : > { %v1573_v57 = vpop.eup %1321 }
 0x33b   : > { %1333 = vpow2.f32 %v912_v56  ;;  %936 = vadd.xlane.f32.xlu1 %v1573_v57 }
 0x33c   : > { %v1576_v58 = vpop.eup %1323 }
 0x33d   : > { %930 = vadd.xlane.f32.xlu0 %v1576_v58 }
 0x33e   : > { %v1579_v59 = vpop.eup %1325 }
 0x33f   : > { %932 = vadd.xlane.f32.xlu1 %v1579_v59 }
 0x340   : > { %v1582_v60 = vpop.eup %1327 }
 0x341   : > { %938 = vadd.xlane.f32.xlu0 %v1582_v60 }
 0x344   : > { %v1585_v61 = vpop.eup %1329 }
 0x345   : > { %v1587_v62 = vpop.eup %1331  ;;  %940 = vadd.xlane.f32.xlu1 %v1585_v61 }
 0x346   : > { %942 = vadd.xlane.f32.xlu0 %v1587_v62 }
 0x348   : > { %v1591_v63 = vpop.eup %1333 }
 0x349   : > { %944 = vadd.xlane.f32.xlu1 %v1591_v63 }
 0x3b0   : > { %v919_v0 = vpop.xlane.xlu0 %918 }
 0x3b1   : > { %1335 = vrcp.f32 %v919_v0 }
 0x3b4   : > { %v921_v1 = vpop.xlane.xlu1 %920  ;;  %v915_v2 = vpop.xlane.xlu0 %914 }
 0x3b5   : > { %1337 = vrcp.f32 %v921_v1 }
 0x3b6   : > { %1339 = vrcp.f32 %v915_v2 }
 0x3b8   : > { %v917_v3 = vpop.xlane.xlu1 %916 }
 0x3b9   : > { %1341 = vrcp.f32 %v917_v3 }
 0x3ba   : > { %v927_v4 = vpop.xlane.xlu0 %926 }
 0x3bb   : > { %1343 = vrcp.f32 %v927_v4 }
 0x3bc   : > { %v929_v5 = vpop.xlane.xlu1 %928 }
 0x3bd   : > { %1345 = vrcp.f32 %v929_v5 }
 0x3be   : > { %v1336_v6 = vpop.eup %1335  ;;  %v923_v7 = vpop.xlane.xlu0 %922 }
 0x3bf   : > { %v951_v8 = vmul.f32 %v1336_v6, %v1539_v23  ;;  %1347 = vrcp.f32 %v923_v7 }
 0x3c0   : > { %v925_v9 = vpop.xlane.xlu1 %924 }
 0x3c1   : > { %981 = vst.msk [vmem:[%s1599_s9 + $0x10] sm:$0xff] %vm978_vm3, %v951_v8  ;;  %1349 = vrcp.f32 %v925_v9 }
 0x3c2   : > { %v1338_v10 = vpop.eup %1337  ;;  %v935_v11 = vpop.xlane.xlu0 %934 }
 0x3c3   : > { %v1340_v12 = vpop.eup %1339  ;;  %v953_v13 = vmul.f32 %v1338_v10, %v1545_v31  ;;  %1351 = vrcp.f32 %v935_v11 }
 0x3c4   : > { %v947_v14 = vmul.f32 %v1340_v12, %v1542_v28  ;;  %v937_v15 = vpop.xlane.xlu1 %936 }
 0x3c5   : > { %982 = vst.msk [vmem:[%s1599_s9 + $0x18] sm:$0xff] %vm978_vm3, %v953_v13  ;;  %1353 = vrcp.f32 %v937_v15 }
 0x3c6   : > { %v1342_v16 = vpop.eup %1341  ;;  %979 = vst.msk [vmem:[%s1599_s9] sm:$0xff] %vm978_vm3, %v947_v14  ;;  %v931_v17 = vpop.xlane.xlu0 %930 }
 0x3c7   : > { %v949_v18 = vmul.f32 %v1342_v16, %v1551_v38  ;;  %1355 = vrcp.f32 %v931_v17 }
 0x3c8   : > { %v1344_v19 = vpop.eup %1343  ;;  %v933_v20 = vpop.xlane.xlu1 %932 }
 0x3c9   : > { %980 = vst.msk [vmem:[%s1599_s9 + $0x8] sm:$0xff] %vm978_vm3, %v949_v18  ;;  %v959_v21 = vmul.f32 %v1344_v19, %v1555_v42  ;;  %1357 = vrcp.f32 %v933_v20 }
 0x3ca   : > { %v1346_v22 = vpop.eup %1345  ;;  %v939_v23 = vpop.xlane.xlu0 %938 }
 0x3cb   : > { %985 = vst.msk [vmem:[%s1599_s9 + $0x30] sm:$0xff] %vm978_vm3, %v959_v21  ;;  %v961_v24 = vmul.f32 %v1346_v22, %v1558_v44  ;;  %1359 = vrcp.f32 %v939_v23 }
 0x3cc   : > { %v1348_v25 = vpop.eup %1347 }
 0x3cd   : > { %986 = vst.msk [vmem:[%s1599_s9 + $0x38] sm:$0xff] %vm978_vm3, %v961_v24  ;;  %v955_v26 = vmul.f32 %v1348_v25, %v1563_v49 }
 0x3ce   : > { %v1350_v27 = vpop.eup %1349  ;;  %v941_v28 = vpop.xlane.xlu1 %940 }
 0x3cf   : > { %983 = vst.msk [vmem:[%s1599_s9 + $0x20] sm:$0xff] %vm978_vm3, %v955_v26  ;;  %v957_v29 = vmul.f32 %v1350_v27, %v1566_v52  ;;  %1361 = vrcp.f32 %v941_v28  ;;  %v943_v30 = vpop.xlane.xlu0 %942 }
 0x3d0   : > { %v1352_v31 = vpop.eup %1351  ;;  %1363 = vrcp.f32 %v943_v30 }
 0x3d1   : > { %984 = vst.msk [vmem:[%s1599_s9 + $0x28] sm:$0xff] %vm978_vm3, %v957_v29  ;;  %v967_v32 = vmul.f32 %v1352_v31, %v1570_v55 }
 0x3d2   : > { %v1354_v33 = vpop.eup %1353  ;;  %v945_v34 = vpop.xlane.xlu1 %944 }
 0x3d3   : > { %989 = vst.msk [vmem:[%s1599_s9 + $0x50] sm:$0xff] %vm978_vm3, %v967_v32  ;;  %v969_v35 = vmul.f32 %v1354_v33, %v1573_v57  ;;  %1365 = vrcp.f32 %v945_v34 }
 0x3d4   : > { %v1356_v36 = vpop.eup %1355 }
 0x3d5   : > { %990 = vst.msk [vmem:[%s1599_s9 + $0x58] sm:$0xff] %vm978_vm3, %v969_v35  ;;  %v963_v37 = vmul.f32 %v1356_v36, %v1576_v58 }
 0x3d6   : > { %v1358_v38 = vpop.eup %1357 }
 0x3d7   : > { %987 = vst.msk [vmem:[%s1599_s9 + $0x40] sm:$0xff] %vm978_vm3, %v963_v37  ;;  %v965_v39 = vmul.f32 %v1358_v38, %v1579_v59 }
 0x3d8   : > { %v1360_v40 = vpop.eup %1359 }
 0x3d9   : > { %988 = vst.msk [vmem:[%s1599_s9 + $0x48] sm:$0xff] %vm978_vm3, %v965_v39  ;;  %v971_v41 = vmul.f32 %v1360_v40, %v1582_v60 }
 0x3db   : > { %991 = vst.msk [vmem:[%s1599_s9 + $0x60] sm:$0xff] %vm978_vm3, %v971_v41 }
 0x3dc   : > { %v1362_v42 = vpop.eup %1361 }
 0x3dd   : > { %v1364_v43 = vpop.eup %1363  ;;  %v973_v44 = vmul.f32 %v1362_v42, %v1585_v61 }
 0x3de   : > { %v975_v45 = vmul.f32 %v1364_v43, %v1587_v62 }
 0x3df   : > { %992 = vst.msk [vmem:[%s1599_s9 + $0x68] sm:$0xff] %vm978_vm3, %v973_v44 }
 0x3e0   : > { %v1366_v46 = vpop.eup %1365  ;;  %993 = vst.msk [vmem:[%s1599_s9 + $0x70] sm:$0xff] %vm978_vm3, %v975_v45 }
 0x3e1   : > { %v977_v47 = vmul.f32 %v1366_v46, %v1591_v63 }
 0x3e3   : > { %994 = vst.msk [vmem:[%s1599_s9 + $0x78] sm:$0xff] %vm978_vm3, %v977_v47 }
 0x3e4 PF: > { %s17_s24 = sadd.s32 1, %s1373_s24  }
 0x3e5   : > { %p14_p4 = scmp.ge.s32.totalorder %s17_s24, 5  }
 0x3e7   :  { %16 = sbr.rel (!%p14_p4) target bundleno = 1 (0x1), region = 78 }

</bundles_post_ra>
